<compile_context>
chip_gen: v6e
topology: v6e:2x2x1
jax: 0.10.0
libtpu: 0.0.40
codegen_flags: <defaults>
</compile_context>

<pallas_src>
import functools

import jax
import jax.numpy as jnp
from jax import lax
from jax.experimental import pallas as pl
from jax.experimental.pallas import tpu as pltpu


def _round_up(v, m):
    return -(-v // m) * m


def _pack_params(params, n_inp, n_hid, n_out):
    """Pack all weights/biases into one 2D slab with 8-row-aligned sections."""
    f32 = jnp.float32
    w_i2h = jnp.asarray(params["i2h_w"], f32)   # (n_hid, n_inp + 2*n_hid)
    b_i2h = jnp.asarray(params["i2h_b"], f32)
    w_i2p = jnp.asarray(params["i2p_w"], f32)
    b_i2p = jnp.asarray(params["i2p_b"], f32)
    w_ro = jnp.asarray(params["ro_w"], f32)     # (n_out, n_hid)
    b_ro = jnp.asarray(params["ro_b"], f32)

    wih_t = w_i2h.T                              # (n_inp + 2*n_hid, n_hid)
    wip_t = w_i2p.T
    cols = max(n_hid, n_out)

    sections = [
        ("wih_x", wih_t[:n_inp]),                # (n_inp, n_hid)
        ("wip_x", wip_t[:n_inp]),
        ("wih_h", wih_t[n_inp:]),                # (2*n_hid, n_hid) = [W_hz; W_hy]
        ("wip_h", wip_t[n_inp:]),
        ("bih", b_i2h.reshape(1, n_hid)),
        ("bip", b_i2p.reshape(1, n_hid)),
        ("wro", w_ro.T),                         # (n_hid, n_out)
        ("bro", b_ro.reshape(1, n_out)),
    ]
    blocks, offs, off = [], {}, 0
    for name, a in sections:
        r, c = a.shape
        rp = _round_up(r, 8)                     # sublane-align every section
        blocks.append(jnp.pad(a, ((0, rp - r), (0, cols - c))))
        offs[name] = off
        off += rp
    slab = jnp.concatenate(blocks, axis=0)       # (total_rows, cols)
    return slab, offs


def _hystrnn_kernel(
    x_ref,      # (T*Bp, n_inp)   input, VMEM
    slab_ref,   # (rows, cols)    packed weights/biases, VMEM
    out_ref,    # (Bp, n_out)     output, VMEM
    xh_ref,     # (T*Bp, n_hid)   VMEM scratch: hoisted i2h input projection
    xp_ref,     # (T*Bp, n_hid)   VMEM scratch: hoisted i2p input projection
    *, dt: float, T: int, Bp: int, n_inp: int, n_hid: int, n_out: int,
    offs, unroll,
):
    o = offs
    # Loop-invariant weight loads (hoisted; JAX does not CSE these in loops).
    wih_h = slab_ref[o["wih_h"]:o["wih_h"] + 2 * n_hid, :n_hid]   # (2h, h)
    wip_h = slab_ref[o["wip_h"]:o["wip_h"] + 2 * n_hid, :n_hid]

    # ---- Hoisted input projections (independent of hz/hy) -------------------
    x2 = x_ref[...]                                               # (T*Bp, n_inp)
    wih_x = slab_ref[o["wih_x"]:o["wih_x"] + n_inp, :n_hid]
    wip_x = slab_ref[o["wip_x"]:o["wip_x"] + n_inp, :n_hid]
    bih = slab_ref[o["bih"]:o["bih"] + 1, :n_hid]                 # (1, h)
    bip = slab_ref[o["bip"]:o["bip"] + 1, :n_hid]
    xh_ref[...] = jnp.dot(x2, wih_x, preferred_element_type=jnp.float32) + bih
    # |x|^2 == x*x for real inputs.
    xp_ref[...] = jnp.dot(x2 * x2, wip_x, preferred_element_type=jnp.float32) + bip

    # ---- Recurrence: 2 fused (K = 2*n_hid) dots per step --------------------
    def step(t, carry):
        hy, hz = carry
        row = pl.multiple_of(t * Bp, Bp)
        xh_t = xh_ref[pl.ds(row, Bp), :]                          # (Bp, h)
        xp_t = xp_ref[pl.ds(row, Bp), :]

        hh = jnp.concatenate([hz, hy], axis=-1)                   # (Bp, 2h)
        # hp  = tanh( [|x|^2 | |hz|^2 | |hy|^2] @ Wip.T + bip )
        pre_p = xp_t + jnp.dot(hh * hh, wip_h, preferred_element_type=jnp.float32)
        # pre = [x | hz | hy] @ Wih.T + bih
        pre_h = xh_t + jnp.dot(hh, wih_h, preferred_element_type=jnp.float32)

        hz = hz + dt * (jnp.tanh(pre_h) + jnp.tanh(pre_p))
        hy = hy + dt * hz
        return hy, hz

    hy0 = jnp.zeros((Bp, n_hid), jnp.float32)
    hz0 = jnp.zeros((Bp, n_hid), jnp.float32)
    hy, _ = lax.fori_loop(0, T, step, (hy0, hz0), unroll=unroll)

    # ---- Readout -------------------------------------------------------------
    wro = slab_ref[o["wro"]:o["wro"] + n_hid, :]                  # (h, cols), zero-padded
    bro = slab_ref[o["bro"]:o["bro"] + 1, :]                      # (1, cols)
    res = jnp.dot(hy, wro, preferred_element_type=jnp.float32) + bro
    out_ref[...] = res[:, :n_out].astype(out_ref.dtype)


def hystrnn_forward(x, params, dt):
    """x: (T, B, n_inp) float32 (time-major, like PyTorch x[t]). Returns (B, n_out)."""
    x = jnp.asarray(x, jnp.float32)
    T, B, n_inp = x.shape
    n_hid = params["i2h_w"].shape[0]
    n_out = params["ro_w"].shape[0]

    slab, offs = _pack_params(params, n_inp, n_hid, n_out)

    # Pad batch to the 8-sublane granule; padded rows never affect real rows.
    Bp = max(8, _round_up(B, 8))
    if Bp != B:
        x = jnp.pad(x, ((0, 0), (0, Bp - B), (0, 0)))
    x2 = x.reshape(T * Bp, n_inp)

    # Short fixed trip count: fully unroll for LLO scheduler visibility.
    unroll = True if T <= 16 else 8

    kernel = functools.partial(
        _hystrnn_kernel, dt=float(dt), T=T, Bp=Bp, n_inp=n_inp,
        n_hid=n_hid, n_out=n_out, offs=offs, unroll=unroll,
    )

    vmem = pl.BlockSpec(memory_space=pltpu.MemorySpace.VMEM)
    out = pl.pallas_call(
        kernel,
        out_shape=jax.ShapeDtypeStruct((Bp, n_out), jnp.float32),
        in_specs=[vmem, vmem],       # x, packed weight slab -> 2 DMAs
        out_specs=vmem,
        scratch_shapes=[
            pltpu.VMEM((T * Bp, n_hid), jnp.float32),   # xh (hoisted i2h proj)
            pltpu.VMEM((T * Bp, n_hid), jnp.float32),   # xp (hoisted i2p proj)
        ],
    )(x2, slab)
    return out[:B]


def hystrnn_reference(x, params, dt):
    """Pure-JAX reference mirroring the PyTorch forward exactly."""
    T, B, n_inp = x.shape
    w_i2h, b_i2h = params["i2h_w"], params["i2h_b"]
    w_i2p, b_i2p = params["i2p_w"], params["i2p_b"]
    w_ro, b_ro = params["ro_w"], params["ro_b"]
    n_hid = w_i2h.shape[0]
    hy = jnp.zeros((B, n_hid), jnp.float32)
    hz = jnp.zeros((B, n_hid), jnp.float32)
    for t in range(T):
        xt = x[t]
        hp = jnp.tanh(
            jnp.concatenate(
                [jnp.abs(xt) ** 2, jnp.abs(hz) ** 2, jnp.abs(hy) ** 2], axis=1
            ) @ w_i2p.T + b_i2p
        )
        hz = hz + dt * (
            jnp.tanh(jnp.concatenate([xt, hz, hy], axis=1) @ w_i2h.T + b_i2h) + hp
        )
        hy = hy + dt * hz
    return hy @ w_ro.T + b_ro


if __name__ == "__main__":
    T, B, n_inp, n_hid, n_out = 8, 2, 4, 32, 2
    dt = 0.1

    key = jax.random.PRNGKey(0)
    ks = jax.random.split(key, 8)
    cat_dim = n_inp + 2 * n_hid
    # Deterministic synthetic params (uniform like nn.Linear default scale).
    s1 = 1.0 / jnp.sqrt(cat_dim)
    s2 = 1.0 / jnp.sqrt(n_hid)
    params = {
        "i2h_w": jax.random.uniform(ks[0], (n_hid, cat_dim), jnp.float32, -s1, s1),
        "i2h_b": jax.random.uniform(ks[1], (n_hid,), jnp.float32, -s1, s1),
        "i2p_w": jax.random.uniform(ks[2], (n_hid, cat_dim), jnp.float32, -s1, s1),
        "i2p_b": jax.random.uniform(ks[3], (n_hid,), jnp.float32, -s1, s1),
        "ro_w": jax.random.uniform(ks[4], (n_out, n_hid), jnp.float32, -s2, s2),
        "ro_b": jax.random.uniform(ks[5], (n_out,), jnp.float32, -s2, s2),
    }
    x = jax.random.normal(ks[6], (T, B, n_inp), jnp.float32)

    out = hystrnn_forward(x, params, dt)
    out = jax.block_until_ready(out)

    ref = hystrnn_reference(x, params, dt)
    assert out.shape == (B, n_out)
    assert jnp.allclose(out, ref, atol=1e-5, rtol=1e-5), (out, ref)
    print("KERNEL_OK")
</pallas_src>

<mosaic_0001>
module attributes {stable_mosaic.version = 11 : i64} {
  func.func @_hystrnn_kernel(%arg0: memref<64x4xf32, #tpu.memory_space<vmem>>, %arg1: memref<200x32xf32, #tpu.memory_space<vmem>>, %arg2: memref<8x2xf32, #tpu.memory_space<vmem>>, %arg3: memref<64x32xf32, #tpu.memory_space<vmem>>, %arg4: memref<64x32xf32, #tpu.memory_space<vmem>>) attributes {dimension_semantics = [], scalar_prefetch = 0 : i64, scratch_operands = 2 : i64, tpu.core_type = #tpu.core_type<tc>} {
    %c16 = arith.constant 16 : index
    %c0 = arith.constant 0 : index
    %0 = vector.load %arg1[%c16, %c0] : memref<200x32xf32, #tpu.memory_space<vmem>>, vector<64x32xf32>
    %c80 = arith.constant 80 : index
    %c0_0 = arith.constant 0 : index
    %1 = vector.load %arg1[%c80, %c0_0] : memref<200x32xf32, #tpu.memory_space<vmem>>, vector<64x32xf32>
    %c0_1 = arith.constant 0 : index
    %c0_2 = arith.constant 0 : index
    %2 = vector.load %arg0[%c0_1, %c0_2] : memref<64x4xf32, #tpu.memory_space<vmem>>, vector<64x4xf32>
    %c0_3 = arith.constant 0 : index
    %c0_4 = arith.constant 0 : index
    %3 = vector.load %arg1[%c0_3, %c0_4] : memref<200x32xf32, #tpu.memory_space<vmem>>, vector<4x32xf32>
    %c8 = arith.constant 8 : index
    %c0_5 = arith.constant 0 : index
    %4 = vector.load %arg1[%c8, %c0_5] : memref<200x32xf32, #tpu.memory_space<vmem>>, vector<4x32xf32>
    %c144 = arith.constant 144 : index
    %c0_6 = arith.constant 0 : index
    %5 = vector.load %arg1[%c144, %c0_6] : memref<200x32xf32, #tpu.memory_space<vmem>>, vector<1x32xf32>
    %c152 = arith.constant 152 : index
    %c0_7 = arith.constant 0 : index
    %6 = vector.load %arg1[%c152, %c0_7] : memref<200x32xf32, #tpu.memory_space<vmem>>, vector<1x32xf32>
    %cst = arith.constant dense<0.000000e+00> : vector<64x32xf32>
    %7 = tpu.matmul %2, %3, %cst {dimension_numbers = #tpu.dot_dimension_numbers<[1], [0], [0], [1], [0, 0, 1, 1], [], []>} : vector<64x4xf32>, vector<4x32xf32>, vector<64x32xf32> -> vector<64x32xf32>
    %8 = vector.broadcast %5 : vector<1x32xf32> to vector<64x32xf32>
    %9 = arith.addf %7, %8 : vector<64x32xf32>
    %c0_8 = arith.constant 0 : index
    %c0_9 = arith.constant 0 : index
    %10 = vector.load %arg3[%c0_8, %c0_9] : memref<64x32xf32, #tpu.memory_space<vmem>>, vector<64x32xf32>
    tpu.vector_store %arg3[%c0_8, %c0_9], %9 {strides = array<i32>} : memref<64x32xf32, #tpu.memory_space<vmem>>, vector<64x32xf32>,
    %11 = arith.mulf %2, %2 : vector<64x4xf32>
    %cst_10 = arith.constant dense<0.000000e+00> : vector<64x32xf32>
    %12 = tpu.matmul %11, %4, %cst_10 {dimension_numbers = #tpu.dot_dimension_numbers<[1], [0], [0], [1], [0, 0, 1, 1], [], []>} : vector<64x4xf32>, vector<4x32xf32>, vector<64x32xf32> -> vector<64x32xf32>
    %13 = vector.broadcast %6 : vector<1x32xf32> to vector<64x32xf32>
    %14 = arith.addf %12, %13 : vector<64x32xf32>
    %c0_11 = arith.constant 0 : index
    %c0_12 = arith.constant 0 : index
    %15 = vector.load %arg4[%c0_11, %c0_12] : memref<64x32xf32, #tpu.memory_space<vmem>>, vector<64x32xf32>
    tpu.vector_store %arg4[%c0_11, %c0_12], %14 {strides = array<i32>} : memref<64x32xf32, #tpu.memory_space<vmem>>, vector<64x32xf32>,
    %cst_13 = arith.constant 0.000000e+00 : f32
    %16 = vector.broadcast %cst_13 : f32 to vector<8x32xf32>
    %cst_14 = arith.constant 0.000000e+00 : f32
    %17 = vector.broadcast %cst_14 : f32 to vector<8x32xf32>
    %c0_i32 = arith.constant 0 : i32
    %c8_i32 = arith.constant 8 : i32
    %18 = arith.muli %c0_i32, %c8_i32 : i32
    %19 = tpu.assume_multiple %18, 8 : i32
    %20 = arith.index_cast %19 : i32 to index
    %c0_15 = arith.constant 0 : index
    %21 = vector.load %arg3[%20, %c0_15] : memref<64x32xf32, #tpu.memory_space<vmem>>, vector<8x32xf32>
    %22 = arith.index_cast %19 : i32 to index
    %c0_16 = arith.constant 0 : index
    %23 = vector.load %arg4[%22, %c0_16] : memref<64x32xf32, #tpu.memory_space<vmem>>, vector<8x32xf32>
    %24 = tpu.concatenate %17, %16 in 1 : vector<8x32xf32>, vector<8x32xf32> -> vector<8x64xf32>
    %25 = arith.mulf %24, %24 : vector<8x64xf32>
    %cst_17 = arith.constant dense<0.000000e+00> : vector<8x32xf32>
    %26 = tpu.matmul %25, %1, %cst_17 {dimension_numbers = #tpu.dot_dimension_numbers<[1], [0], [0], [1], [0, 0, 1, 1], [], []>} : vector<8x64xf32>, vector<64x32xf32>, vector<8x32xf32> -> vector<8x32xf32>
    %27 = arith.addf %23, %26 : vector<8x32xf32>
    %cst_18 = arith.constant dense<0.000000e+00> : vector<8x32xf32>
    %28 = tpu.matmul %24, %0, %cst_18 {dimension_numbers = #tpu.dot_dimension_numbers<[1], [0], [0], [1], [0, 0, 1, 1], [], []>} : vector<8x64xf32>, vector<64x32xf32>, vector<8x32xf32> -> vector<8x32xf32>
    %29 = arith.addf %21, %28 : vector<8x32xf32>
    %30 = math.tanh %29 : vector<8x32xf32>
    %31 = math.tanh %27 : vector<8x32xf32>
    %32 = arith.addf %30, %31 : vector<8x32xf32>
    %cst_19 = arith.constant 1.000000e-01 : f32
    %33 = vector.broadcast %cst_19 : f32 to vector<8x32xf32>
    %34 = arith.mulf %33, %32 : vector<8x32xf32>
    %35 = arith.addf %17, %34 : vector<8x32xf32>
    %cst_20 = arith.constant 1.000000e-01 : f32
    %36 = vector.broadcast %cst_20 : f32 to vector<8x32xf32>
    %37 = arith.mulf %36, %35 : vector<8x32xf32>
    %38 = arith.addf %16, %37 : vector<8x32xf32>
    %c1_i32 = arith.constant 1 : i32
    %c8_i32_21 = arith.constant 8 : i32
    %39 = arith.muli %c1_i32, %c8_i32_21 : i32
    %40 = tpu.assume_multiple %39, 8 : i32
    %41 = arith.index_cast %40 : i32 to index
    %c0_22 = arith.constant 0 : index
    %42 = vector.load %arg3[%41, %c0_22] : memref<64x32xf32, #tpu.memory_space<vmem>>, vector<8x32xf32>
    %43 = arith.index_cast %40 : i32 to index
    %c0_23 = arith.constant 0 : index
    %44 = vector.load %arg4[%43, %c0_23] : memref<64x32xf32, #tpu.memory_space<vmem>>, vector<8x32xf32>
    %45 = tpu.concatenate %35, %38 in 1 : vector<8x32xf32>, vector<8x32xf32> -> vector<8x64xf32>
    %46 = arith.mulf %45, %45 : vector<8x64xf32>
    %cst_24 = arith.constant dense<0.000000e+00> : vector<8x32xf32>
    %47 = tpu.matmul %46, %1, %cst_24 {dimension_numbers = #tpu.dot_dimension_numbers<[1], [0], [0], [1], [0, 0, 1, 1], [], []>} : vector<8x64xf32>, vector<64x32xf32>, vector<8x32xf32> -> vector<8x32xf32>
    %48 = arith.addf %44, %47 : vector<8x32xf32>
    %cst_25 = arith.constant dense<0.000000e+00> : vector<8x32xf32>
    %49 = tpu.matmul %45, %0, %cst_25 {dimension_numbers = #tpu.dot_dimension_numbers<[1], [0], [0], [1], [0, 0, 1, 1], [], []>} : vector<8x64xf32>, vector<64x32xf32>, vector<8x32xf32> -> vector<8x32xf32>
    %50 = arith.addf %42, %49 : vector<8x32xf32>
    %51 = math.tanh %50 : vector<8x32xf32>
    %52 = math.tanh %48 : vector<8x32xf32>
    %53 = arith.addf %51, %52 : vector<8x32xf32>
    %cst_26 = arith.constant 1.000000e-01 : f32
    %54 = vector.broadcast %cst_26 : f32 to vector<8x32xf32>
    %55 = arith.mulf %54, %53 : vector<8x32xf32>
    %56 = arith.addf %35, %55 : vector<8x32xf32>
    %cst_27 = arith.constant 1.000000e-01 : f32
    %57 = vector.broadcast %cst_27 : f32 to vector<8x32xf32>
    %58 = arith.mulf %57, %56 : vector<8x32xf32>
    %59 = arith.addf %38, %58 : vector<8x32xf32>
    %c2_i32 = arith.constant 2 : i32
    %c8_i32_28 = arith.constant 8 : i32
    %60 = arith.muli %c2_i32, %c8_i32_28 : i32
    %61 = tpu.assume_multiple %60, 8 : i32
    %62 = arith.index_cast %61 : i32 to index
    %c0_29 = arith.constant 0 : index
    %63 = vector.load %arg3[%62, %c0_29] : memref<64x32xf32, #tpu.memory_space<vmem>>, vector<8x32xf32>
    %64 = arith.index_cast %61 : i32 to index
    %c0_30 = arith.constant 0 : index
    %65 = vector.load %arg4[%64, %c0_30] : memref<64x32xf32, #tpu.memory_space<vmem>>, vector<8x32xf32>
    %66 = tpu.concatenate %56, %59 in 1 : vector<8x32xf32>, vector<8x32xf32> -> vector<8x64xf32>
    %67 = arith.mulf %66, %66 : vector<8x64xf32>
    %cst_31 = arith.constant dense<0.000000e+00> : vector<8x32xf32>
    %68 = tpu.matmul %67, %1, %cst_31 {dimension_numbers = #tpu.dot_dimension_numbers<[1], [0], [0], [1], [0, 0, 1, 1], [], []>} : vector<8x64xf32>, vector<64x32xf32>, vector<8x32xf32> -> vector<8x32xf32>
    %69 = arith.addf %65, %68 : vector<8x32xf32>
    %cst_32 = arith.constant dense<0.000000e+00> : vector<8x32xf32>
    %70 = tpu.matmul %66, %0, %cst_32 {dimension_numbers = #tpu.dot_dimension_numbers<[1], [0], [0], [1], [0, 0, 1, 1], [], []>} : vector<8x64xf32>, vector<64x32xf32>, vector<8x32xf32> -> vector<8x32xf32>
    %71 = arith.addf %63, %70 : vector<8x32xf32>
    %72 = math.tanh %71 : vector<8x32xf32>
    %73 = math.tanh %69 : vector<8x32xf32>
    %74 = arith.addf %72, %73 : vector<8x32xf32>
    %cst_33 = arith.constant 1.000000e-01 : f32
    %75 = vector.broadcast %cst_33 : f32 to vector<8x32xf32>
    %76 = arith.mulf %75, %74 : vector<8x32xf32>
    %77 = arith.addf %56, %76 : vector<8x32xf32>
    %cst_34 = arith.constant 1.000000e-01 : f32
    %78 = vector.broadcast %cst_34 : f32 to vector<8x32xf32>
    %79 = arith.mulf %78, %77 : vector<8x32xf32>
    %80 = arith.addf %59, %79 : vector<8x32xf32>
    %c3_i32 = arith.constant 3 : i32
    %c8_i32_35 = arith.constant 8 : i32
    %81 = arith.muli %c3_i32, %c8_i32_35 : i32
    %82 = tpu.assume_multiple %81, 8 : i32
    %83 = arith.index_cast %82 : i32 to index
    %c0_36 = arith.constant 0 : index
    %84 = vector.load %arg3[%83, %c0_36] : memref<64x32xf32, #tpu.memory_space<vmem>>, vector<8x32xf32>
    %85 = arith.index_cast %82 : i32 to index
    %c0_37 = arith.constant 0 : index
    %86 = vector.load %arg4[%85, %c0_37] : memref<64x32xf32, #tpu.memory_space<vmem>>, vector<8x32xf32>
    %87 = tpu.concatenate %77, %80 in 1 : vector<8x32xf32>, vector<8x32xf32> -> vector<8x64xf32>
    %88 = arith.mulf %87, %87 : vector<8x64xf32>
    %cst_38 = arith.constant dense<0.000000e+00> : vector<8x32xf32>
    %89 = tpu.matmul %88, %1, %cst_38 {dimension_numbers = #tpu.dot_dimension_numbers<[1], [0], [0], [1], [0, 0, 1, 1], [], []>} : vector<8x64xf32>, vector<64x32xf32>, vector<8x32xf32> -> vector<8x32xf32>
    %90 = arith.addf %86, %89 : vector<8x32xf32>
    %cst_39 = arith.constant dense<0.000000e+00> : vector<8x32xf32>
    %91 = tpu.matmul %87, %0, %cst_39 {dimension_numbers = #tpu.dot_dimension_numbers<[1], [0], [0], [1], [0, 0, 1, 1], [], []>} : vector<8x64xf32>, vector<64x32xf32>, vector<8x32xf32> -> vector<8x32xf32>
    %92 = arith.addf %84, %91 : vector<8x32xf32>
    %93 = math.tanh %92 : vector<8x32xf32>
    %94 = math.tanh %90 : vector<8x32xf32>
    %95 = arith.addf %93, %94 : vector<8x32xf32>
    %cst_40 = arith.constant 1.000000e-01 : f32
    %96 = vector.broadcast %cst_40 : f32 to vector<8x32xf32>
    %97 = arith.mulf %96, %95 : vector<8x32xf32>
    %98 = arith.addf %77, %97 : vector<8x32xf32>
    %cst_41 = arith.constant 1.000000e-01 : f32
    %99 = vector.broadcast %cst_41 : f32 to vector<8x32xf32>
    %100 = arith.mulf %99, %98 : vector<8x32xf32>
    %101 = arith.addf %80, %100 : vector<8x32xf32>
    %c4_i32 = arith.constant 4 : i32
    %c8_i32_42 = arith.constant 8 : i32
    %102 = arith.muli %c4_i32, %c8_i32_42 : i32
    %103 = tpu.assume_multiple %102, 8 : i32
    %104 = arith.index_cast %103 : i32 to index
    %c0_43 = arith.constant 0 : index
    %105 = vector.load %arg3[%104, %c0_43] : memref<64x32xf32, #tpu.memory_space<vmem>>, vector<8x32xf32>
    %106 = arith.index_cast %103 : i32 to index
    %c0_44 = arith.constant 0 : index
    %107 = vector.load %arg4[%106, %c0_44] : memref<64x32xf32, #tpu.memory_space<vmem>>, vector<8x32xf32>
    %108 = tpu.concatenate %98, %101 in 1 : vector<8x32xf32>, vector<8x32xf32> -> vector<8x64xf32>
    %109 = arith.mulf %108, %108 : vector<8x64xf32>
    %cst_45 = arith.constant dense<0.000000e+00> : vector<8x32xf32>
    %110 = tpu.matmul %109, %1, %cst_45 {dimension_numbers = #tpu.dot_dimension_numbers<[1], [0], [0], [1], [0, 0, 1, 1], [], []>} : vector<8x64xf32>, vector<64x32xf32>, vector<8x32xf32> -> vector<8x32xf32>
    %111 = arith.addf %107, %110 : vector<8x32xf32>
    %cst_46 = arith.constant dense<0.000000e+00> : vector<8x32xf32>
    %112 = tpu.matmul %108, %0, %cst_46 {dimension_numbers = #tpu.dot_dimension_numbers<[1], [0], [0], [1], [0, 0, 1, 1], [], []>} : vector<8x64xf32>, vector<64x32xf32>, vector<8x32xf32> -> vector<8x32xf32>
    %113 = arith.addf %105, %112 : vector<8x32xf32>
    %114 = math.tanh %113 : vector<8x32xf32>
    %115 = math.tanh %111 : vector<8x32xf32>
    %116 = arith.addf %114, %115 : vector<8x32xf32>
    %cst_47 = arith.constant 1.000000e-01 : f32
    %117 = vector.broadcast %cst_47 : f32 to vector<8x32xf32>
    %118 = arith.mulf %117, %116 : vector<8x32xf32>
    %119 = arith.addf %98, %118 : vector<8x32xf32>
    %cst_48 = arith.constant 1.000000e-01 : f32
    %120 = vector.broadcast %cst_48 : f32 to vector<8x32xf32>
    %121 = arith.mulf %120, %119 : vector<8x32xf32>
    %122 = arith.addf %101, %121 : vector<8x32xf32>
    %c5_i32 = arith.constant 5 : i32
    %c8_i32_49 = arith.constant 8 : i32
    %123 = arith.muli %c5_i32, %c8_i32_49 : i32
    %124 = tpu.assume_multiple %123, 8 : i32
    %125 = arith.index_cast %124 : i32 to index
    %c0_50 = arith.constant 0 : index
    %126 = vector.load %arg3[%125, %c0_50] : memref<64x32xf32, #tpu.memory_space<vmem>>, vector<8x32xf32>
    %127 = arith.index_cast %124 : i32 to index
    %c0_51 = arith.constant 0 : index
    %128 = vector.load %arg4[%127, %c0_51] : memref<64x32xf32, #tpu.memory_space<vmem>>, vector<8x32xf32>
    %129 = tpu.concatenate %119, %122 in 1 : vector<8x32xf32>, vector<8x32xf32> -> vector<8x64xf32>
    %130 = arith.mulf %129, %129 : vector<8x64xf32>
    %cst_52 = arith.constant dense<0.000000e+00> : vector<8x32xf32>
    %131 = tpu.matmul %130, %1, %cst_52 {dimension_numbers = #tpu.dot_dimension_numbers<[1], [0], [0], [1], [0, 0, 1, 1], [], []>} : vector<8x64xf32>, vector<64x32xf32>, vector<8x32xf32> -> vector<8x32xf32>
    %132 = arith.addf %128, %131 : vector<8x32xf32>
    %cst_53 = arith.constant dense<0.000000e+00> : vector<8x32xf32>
    %133 = tpu.matmul %129, %0, %cst_53 {dimension_numbers = #tpu.dot_dimension_numbers<[1], [0], [0], [1], [0, 0, 1, 1], [], []>} : vector<8x64xf32>, vector<64x32xf32>, vector<8x32xf32> -> vector<8x32xf32>
    %134 = arith.addf %126, %133 : vector<8x32xf32>
    %135 = math.tanh %134 : vector<8x32xf32>
    %136 = math.tanh %132 : vector<8x32xf32>
    %137 = arith.addf %135, %136 : vector<8x32xf32>
    %cst_54 = arith.constant 1.000000e-01 : f32
    %138 = vector.broadcast %cst_54 : f32 to vector<8x32xf32>
    %139 = arith.mulf %138, %137 : vector<8x32xf32>
    %140 = arith.addf %119, %139 : vector<8x32xf32>
    %cst_55 = arith.constant 1.000000e-01 : f32
    %141 = vector.broadcast %cst_55 : f32 to vector<8x32xf32>
    %142 = arith.mulf %141, %140 : vector<8x32xf32>
    %143 = arith.addf %122, %142 : vector<8x32xf32>
    %c6_i32 = arith.constant 6 : i32
    %c8_i32_56 = arith.constant 8 : i32
    %144 = arith.muli %c6_i32, %c8_i32_56 : i32
    %145 = tpu.assume_multiple %144, 8 : i32
    %146 = arith.index_cast %145 : i32 to index
    %c0_57 = arith.constant 0 : index
    %147 = vector.load %arg3[%146, %c0_57] : memref<64x32xf32, #tpu.memory_space<vmem>>, vector<8x32xf32>
    %148 = arith.index_cast %145 : i32 to index
    %c0_58 = arith.constant 0 : index
    %149 = vector.load %arg4[%148, %c0_58] : memref<64x32xf32, #tpu.memory_space<vmem>>, vector<8x32xf32>
    %150 = tpu.concatenate %140, %143 in 1 : vector<8x32xf32>, vector<8x32xf32> -> vector<8x64xf32>
    %151 = arith.mulf %150, %150 : vector<8x64xf32>
    %cst_59 = arith.constant dense<0.000000e+00> : vector<8x32xf32>
    %152 = tpu.matmul %151, %1, %cst_59 {dimension_numbers = #tpu.dot_dimension_numbers<[1], [0], [0], [1], [0, 0, 1, 1], [], []>} : vector<8x64xf32>, vector<64x32xf32>, vector<8x32xf32> -> vector<8x32xf32>
    %153 = arith.addf %149, %152 : vector<8x32xf32>
    %cst_60 = arith.constant dense<0.000000e+00> : vector<8x32xf32>
    %154 = tpu.matmul %150, %0, %cst_60 {dimension_numbers = #tpu.dot_dimension_numbers<[1], [0], [0], [1], [0, 0, 1, 1], [], []>} : vector<8x64xf32>, vector<64x32xf32>, vector<8x32xf32> -> vector<8x32xf32>
    %155 = arith.addf %147, %154 : vector<8x32xf32>
    %156 = math.tanh %155 : vector<8x32xf32>
    %157 = math.tanh %153 : vector<8x32xf32>
    %158 = arith.addf %156, %157 : vector<8x32xf32>
    %cst_61 = arith.constant 1.000000e-01 : f32
    %159 = vector.broadcast %cst_61 : f32 to vector<8x32xf32>
    %160 = arith.mulf %159, %158 : vector<8x32xf32>
    %161 = arith.addf %140, %160 : vector<8x32xf32>
    %cst_62 = arith.constant 1.000000e-01 : f32
    %162 = vector.broadcast %cst_62 : f32 to vector<8x32xf32>
    %163 = arith.mulf %162, %161 : vector<8x32xf32>
    %164 = arith.addf %143, %163 : vector<8x32xf32>
    %c7_i32 = arith.constant 7 : i32
    %c8_i32_63 = arith.constant 8 : i32
    %165 = arith.muli %c7_i32, %c8_i32_63 : i32
    %166 = tpu.assume_multiple %165, 8 : i32
    %167 = arith.index_cast %166 : i32 to index
    %c0_64 = arith.constant 0 : index
    %168 = vector.load %arg3[%167, %c0_64] : memref<64x32xf32, #tpu.memory_space<vmem>>, vector<8x32xf32>
    %169 = arith.index_cast %166 : i32 to index
    %c0_65 = arith.constant 0 : index
    %170 = vector.load %arg4[%169, %c0_65] : memref<64x32xf32, #tpu.memory_space<vmem>>, vector<8x32xf32>
    %171 = tpu.concatenate %161, %164 in 1 : vector<8x32xf32>, vector<8x32xf32> -> vector<8x64xf32>
    %172 = arith.mulf %171, %171 : vector<8x64xf32>
    %cst_66 = arith.constant dense<0.000000e+00> : vector<8x32xf32>
    %173 = tpu.matmul %172, %1, %cst_66 {dimension_numbers = #tpu.dot_dimension_numbers<[1], [0], [0], [1], [0, 0, 1, 1], [], []>} : vector<8x64xf32>, vector<64x32xf32>, vector<8x32xf32> -> vector<8x32xf32>
    %174 = arith.addf %170, %173 : vector<8x32xf32>
    %cst_67 = arith.constant dense<0.000000e+00> : vector<8x32xf32>
    %175 = tpu.matmul %171, %0, %cst_67 {dimension_numbers = #tpu.dot_dimension_numbers<[1], [0], [0], [1], [0, 0, 1, 1], [], []>} : vector<8x64xf32>, vector<64x32xf32>, vector<8x32xf32> -> vector<8x32xf32>
    %176 = arith.addf %168, %175 : vector<8x32xf32>
    %177 = math.tanh %176 : vector<8x32xf32>
    %178 = math.tanh %174 : vector<8x32xf32>
    %179 = arith.addf %177, %178 : vector<8x32xf32>
    %cst_68 = arith.constant 1.000000e-01 : f32
    %180 = vector.broadcast %cst_68 : f32 to vector<8x32xf32>
    %181 = arith.mulf %180, %179 : vector<8x32xf32>
    %182 = arith.addf %161, %181 : vector<8x32xf32>
    %cst_69 = arith.constant 1.000000e-01 : f32
    %183 = vector.broadcast %cst_69 : f32 to vector<8x32xf32>
    %184 = arith.mulf %183, %182 : vector<8x32xf32>
    %185 = arith.addf %164, %184 : vector<8x32xf32>
    %c8_i32_70 = arith.constant 8 : i32
    %c160 = arith.constant 160 : index
    %c0_71 = arith.constant 0 : index
    %186 = vector.load %arg1[%c160, %c0_71] : memref<200x32xf32, #tpu.memory_space<vmem>>, vector<32x32xf32>
    %c192 = arith.constant 192 : index
    %c0_72 = arith.constant 0 : index
    %187 = vector.load %arg1[%c192, %c0_72] : memref<200x32xf32, #tpu.memory_space<vmem>>, vector<1x32xf32>
    %cst_73 = arith.constant dense<0.000000e+00> : vector<8x32xf32>
    %188 = tpu.matmul %185, %186, %cst_73 {dimension_numbers = #tpu.dot_dimension_numbers<[1], [0], [0], [1], [0, 0, 1, 1], [], []>} : vector<8x32xf32>, vector<32x32xf32>, vector<8x32xf32> -> vector<8x32xf32>
    %189 = vector.broadcast %187 : vector<1x32xf32> to vector<8x32xf32>
    %190 = arith.addf %188, %189 : vector<8x32xf32>
    %191 = vector.extract_strided_slice %190 {offsets = [0, 0], sizes = [8, 2], strides = [1, 1]} : vector<8x32xf32> to vector<8x2xf32>
    %c0_74 = arith.constant 0 : index
    %c0_75 = arith.constant 0 : index
    %192 = vector.load %arg2[%c0_74, %c0_75] : memref<8x2xf32, #tpu.memory_space<vmem>>, vector<8x2xf32>
    tpu.vector_store %arg2[%c0_74, %c0_75], %191 {strides = array<i32>} : memref<8x2xf32, #tpu.memory_space<vmem>>, vector<8x2xf32>,
    return
  }
}

</mosaic_0001>

<bundles_post_ra>
// kernel: tpu_custom_call.1
= control target key start
LH: loop header
LB: loop body
LE: loop exit
PB: predicated region body
PF: predicated region fallthrough
CT: control target
= control target key end

     0   :  { %vm68_vm0 = vcmask 1043456   ;;  %vm43_vm1 = vcmask 31744   ;;  %v2317_v9 = vmov 0.0   ;;  %vm2318_vm2 = vmmov 0   ;;  %s2319_s8 = smov 32   ;;  %s2826_s1 = inlined_call_operand.vmem [shape: f32[200,32], index: 1, kind: input, shape index: {}]   ;;  %s2827_s0 = inlined_call_operand.vmem [shape: f32[64,4], index: 0, kind: input, shape index: {}]   ;;  %s2828_s2 = inlined_call_operand.vmem [shape: f32[8,2], index: 2, kind: output, shape index: {}]  }
   0x1   :  { %v35_v0 = vld [vmem:[%s2826_s1] sm:$0xf]  ;;  %v36_v1 = vld [vmem:[%s2826_s1 + $0x8] sm:$0xf]  ;;  %v29_v8 = vld [vmem:[%s2827_s0 + $0x10] sm:$0xff]  ;;  %vm177_vm3 = vcmask 261120  }
   0x2   :  { %v27_v2 = vld [vmem:[%s2827_s0] sm:$0xff]  ;;  %1939 = vmatprep.subr.msk.mxu0 %vm68_vm0, %v35_v0  ;;  %1953 = vmatprep.subr.msk.mxu1 %vm68_vm0, %v36_v1  ;;  %v28_v3 = vld [vmem:[%s2827_s0 + $0x8] sm:$0xff]  ;;  %v30_v10 = vld [vmem:[%s2827_s0 + $0x18] sm:$0xff]  ;;  %v188_v12 = vmul.f32 %v29_v8, %v29_v8  ;;  %vm340_vm4 = vcmask 523264   ;;  %vm1730_vm5 = vcmask 15360  }
   0x3   :  { %v186_v4 = vmul.f32 %v27_v2, %v27_v2  ;;  %1940 = vmatpush3.msk.msra.mxu0 %vm68_vm0, %v35_v0  ;;  %1941 = vmatprep.mubr.msk.f32.mxu0 %vm43_vm1, %v27_v2  ;;  %v187_v5 = vmul.f32 %v28_v3, %v28_v3  ;;  %v2352_v6 = vld [vmem:[%s2826_s1 + $0x88] sm:$0xff]  ;;  %v2372_v11 = vld [vmem:[%s2826_s1 + $0x80] sm:$0xff]  ;;  %v189_v14 = vmul.f32 %v30_v10, %v30_v10  ;;  %v2390_v15 = vld [vmem:[%s2826_s1 + $0x78] sm:$0xff] }
   0x4   :  { %1954 = vmatpush3.msk.msra.mxu1 %vm68_vm0, %v36_v1  ;;  %1942 = vmatmul.mubr.msk.f32.vlgmr.msra.gmra.mxu0 %vm43_vm1, %v28_v3  ;;  %v2357_v7 = vld [vmem:[%s2826_s1 + $0x48] sm:$0xff]  ;;  %v2379_v13 = vld [vmem:[%s2826_s1 + $0x40] sm:$0xff]  ;;  %v2395_v16 = vld [vmem:[%s2826_s1 + $0x38] sm:$0xff] }
   0x5   :  { %1955 = vmatprep.mubr.msk.f32.mxu1 %vm43_vm1, %v186_v4  ;;  %1967 = vmatprep.subr.mxu0 %v2317_v9  ;;  %v31_v17 = vld [vmem:[%s2827_s0 + $0x20] sm:$0xff]  ;;  %v32_v18 = vld [vmem:[%s2827_s0 + $0x28] sm:$0xff]  ;;  %v2410_v19 = vld [vmem:[%s2826_s1 + $0x70] sm:$0xff] }
   0x6   :  { %1986 = vmatprep.subr.mxu1 %v2317_v9  ;;  %1956 = vmatmul.mubr.msk.f32.vlgmr.msra.gmra.mxu1 %vm43_vm1, %v187_v5  ;;  %v190_v20 = vmul.f32 %v31_v17, %v31_v17  ;;  %v2417_v21 = vld [vmem:[%s2826_s1 + $0x30] sm:$0xff]  ;;  %v191_v22 = vmul.f32 %v32_v18, %v32_v18  ;;  %v2428_v23 = vld [vmem:[%s2826_s1 + $0x68] sm:$0xff]  ;;  %v34_v26 = vld [vmem:[%s2827_s0 + $0x38] sm:$0xff] }
   0x7   :  { %1968 = vmatpush3.msra.mxu0 %v2352_v6  ;;  %1987 = vmatpush3.msra.mxu1 %v2357_v7  ;;  %v2433_v24 = vld [vmem:[%s2826_s1 + $0x28] sm:$0xff]  ;;  %v33_v25 = vld [vmem:[%s2827_s0 + $0x30] sm:$0xff]  ;;  %v2448_v27 = vld [vmem:[%s2826_s1 + $0x60] sm:$0xff]  ;;  %v193_v30 = vmul.f32 %v34_v26, %v34_v26 }
   0x8   :  { %1969 = vmatprep.subr.mxu0 %v2317_v9  ;;  %1988 = vmatprep.subr.mxu1 %v2317_v9  ;;  %v192_v28 = vmul.f32 %v33_v25, %v33_v25  ;;  %v2455_v29 = vld [vmem:[%s2826_s1 + $0x20] sm:$0xff]  ;;  %v2466_v31 = vld [vmem:[%s2826_s1 + $0x58] sm:$0xff]  ;;  %v2480_v33 = vld [vmem:[%s2826_s1 + $0x50] sm:$0xff] }
   0x9   :  { %1944 = vmatprep.mubr.msk.f32.mxu0 %vm43_vm1, %v29_v8  ;;  %1970 = vmatpush3.msra.mxu0 %v2372_v11  ;;  %v2471_v32 = vld [vmem:[%s2826_s1 + $0x18] sm:$0xff]  ;;  %v2487_v34 = vld [vmem:[%s2826_s1 + $0x10] sm:$0xff] }
   0xa   :  { %1989 = vmatpush3.msra.mxu1 %v2379_v13  ;;  %1945 = vmatmul.mubr.msk.f32.gmra.mxu0 %vm43_vm1, %v30_v10  ;;  %v1736_v35 = vld [vmem:[%s2826_s1 + $0x90] ss:$0 sm:$0xff]  ;;  %v1746_v37 = vld [vmem:[%s2826_s1 + $0x98] ss:$0 sm:$0xff] }
   0xb   :  { %1958 = vmatprep.mubr.msk.f32.mxu1 %vm43_vm1, %v188_v12  ;;  %1971 = vmatprep.subr.mxu0 %v2317_v9 }
   0xc   :  { %1990 = vmatprep.subr.mxu1 %v2317_v9  ;;  %1959 = vmatmul.mubr.msk.f32.gmra.mxu1 %vm43_vm1, %v189_v14 }
   0xd   :  { %1972 = vmatpush3.msra.mxu0 %v2390_v15  ;;  %1991 = vmatpush3.msra.mxu1 %v2395_v16 }
   0xe   :  { %1973 = vmatprep.subr.mxu0 %v2317_v9  ;;  %1992 = vmatprep.subr.mxu1 %v2317_v9 }
   0xf   :  { %1947 = vmatprep.mubr.msk.f32.mxu0 %vm43_vm1, %v31_v17  ;;  %1974 = vmatpush3.msra.mxu0 %v2410_v19 }
  0x10   :  { %1993 = vmatpush3.msra.mxu1 %v2417_v21  ;;  %1948 = vmatmul.mubr.msk.f32.gmra.mxu0 %vm43_vm1, %v32_v18 }
  0x11   :  { %1961 = vmatprep.mubr.msk.f32.mxu1 %vm43_vm1, %v190_v20  ;;  %1975 = vmatprep.subr.mxu0 %v2317_v9 }
  0x12   :  { %1994 = vmatprep.subr.mxu1 %v2317_v9  ;;  %1962 = vmatmul.mubr.msk.f32.gmra.mxu1 %vm43_vm1, %v191_v22 }
  0x13   :  { %1976 = vmatpush3.msra.mxu0 %v2428_v23  ;;  %1995 = vmatpush3.msra.mxu1 %v2433_v24 }
  0x14   :  { %1977 = vmatprep.subr.mxu0 %v2317_v9  ;;  %1996 = vmatprep.subr.mxu1 %v2317_v9 }
  0x15   :  { %1950 = vmatprep.mubr.msk.f32.mxu0 %vm43_vm1, %v33_v25  ;;  %1978 = vmatpush3.msra.mxu0 %v2448_v27 }
  0x16   :  { %1997 = vmatpush3.msra.mxu1 %v2455_v29  ;;  %1951 = vmatmul.mubr.msk.f32.gmra.mxu0 %vm43_vm1, %v34_v26 }
  0x17   :  { %1964 = vmatprep.mubr.msk.f32.mxu1 %vm43_vm1, %v192_v28  ;;  %1979 = vmatprep.subr.mxu0 %v2317_v9 }
  0x18   :  { %1998 = vmatprep.subr.mxu1 %v2317_v9  ;;  %1965 = vmatmul.mubr.msk.f32.gmra.mxu1 %vm43_vm1, %v193_v30 }
  0x19   :  { %1980 = vmatpush3.msra.mxu0 %v2466_v31  ;;  %1999 = vmatpush3.msra.mxu1 %v2471_v32 }
  0x1a   :  { %1981 = vmatprep.subr.mxu0 %v2317_v9  ;;  %2000 = vmatprep.subr.mxu1 %v2317_v9 }
  0x1b   :  { %1982 = vmatpush3.msra.mxu0 %v2480_v33  ;;  %1983 = vmatprep.mubr.msk.f32.mxu0 %vm2318_vm2, %v2317_v9 }
  0x1c   :  { %2001 = vmatpush3.msra.mxu1 %v2487_v34  ;;  %1984 = vmatmul.mubr.f32.vlgmr.msra.gmra.mxu0 %v2317_v9 }
  0x1d   :  { %2002 = vmatprep.mubr.msk.f32.mxu1 %vm2318_vm2, %v2317_v9  ;;  %2024 = vmatprep.subr.mxu1 %v2317_v9 }
  0x1e   :  { %2003 = vmatmul.mubr.f32.vlgmr.msra.gmra.mxu1 %v2317_v9  ;;  %2005 = vmatprep.subr.mxu0 %v2317_v9 }
  0x1f   :  { %2025 = vmatpush3.msra.mxu1 %v2357_v7  ;;  %2006 = vmatpush3.msra.mxu0 %v2352_v6 }
  0x20   :  { %2026 = vmatprep.subr.mxu1 %v2317_v9  ;;  %2007 = vmatprep.subr.mxu0 %v2317_v9 }
  0x21   :  { %2027 = vmatpush3.msra.mxu1 %v2379_v13  ;;  %2008 = vmatpush3.msra.mxu0 %v2372_v11 }
  0x22   :  { %2028 = vmatprep.subr.mxu1 %v2317_v9  ;;  %2009 = vmatprep.subr.mxu0 %v2317_v9 }
  0x23   :  { %2029 = vmatpush3.msra.mxu1 %v2395_v16  ;;  %2010 = vmatpush3.msra.mxu0 %v2390_v15 }
  0x24   :  { %2030 = vmatprep.subr.mxu1 %v2317_v9  ;;  %2011 = vmatprep.subr.mxu0 %v2317_v9 }
  0x25   :  { %2031 = vmatpush3.msra.mxu1 %v2417_v21  ;;  %2012 = vmatpush3.msra.mxu0 %v2410_v19 }
  0x26   :  { %2032 = vmatprep.subr.mxu1 %v2317_v9  ;;  %2013 = vmatprep.subr.mxu0 %v2317_v9 }
  0x27   :  { %2033 = vmatpush3.msra.mxu1 %v2433_v24  ;;  %2014 = vmatpush3.msra.mxu0 %v2428_v23 }
  0x28   :  { %2034 = vmatprep.subr.mxu1 %v2317_v9  ;;  %2015 = vmatprep.subr.mxu0 %v2317_v9 }
  0x29   :  { %2035 = vmatpush3.msra.mxu1 %v2455_v29  ;;  %2016 = vmatpush3.msra.mxu0 %v2448_v27 }
  0x2a   :  { %2036 = vmatprep.subr.mxu1 %v2317_v9  ;;  %2017 = vmatprep.subr.mxu0 %v2317_v9 }
  0x2b   :  { %2037 = vmatpush3.msra.mxu1 %v2471_v32  ;;  %2018 = vmatpush3.msra.mxu0 %v2466_v31 }
  0x2c   :  { %2038 = vmatprep.subr.mxu1 %v2317_v9  ;;  %2040 = vmatprep.mubr.msk.f32.mxu1 %vm2318_vm2, %v2317_v9 }
  0x2d   :  { %2039 = vmatpush3.msra.mxu1 %v2487_v34  ;;  %2019 = vmatprep.subr.mxu0 %v2317_v9 }
  0x2e   :  { %2020 = vmatpush3.msra.mxu0 %v2480_v33  ;;  %2021 = vmatprep.mubr.msk.f32.mxu0 %vm2318_vm2, %v2317_v9 }
  0x2f   :  { %2062 = vmatprep.subr.mxu1 %v2317_v9  ;;  %2043 = vmatprep.subr.mxu0 %v2317_v9 }
  0xc4   :  { %v1943_v36 = vpop.f32.mrf.mxu0 }
  0xc5   :  { %v144_v38 = vadd.f32 %v1943_v36, %v1736_v35 }
  0xc6   :  { %v1957_v39 = vpop.f32.mrf.mxu1  ;;  %v138_v40 = vpop.f32.mrf.mxu0 }
  0xc7   :  { %179 = vst.msk [vmem:[#allocation2 + $0x8] sm:$0xff] %vm177_vm3, %v144_v38  ;;  %v297_v41 = vadd.f32 %v1957_v39, %v1746_v37  ;;  %v139_v42 = vadd.f32 %v1736_v35, %v138_v40 }
  0xc8   :  { %v291_v43 = vpop.f32.mrf.mxu1 }
  0xc9   :  { %331 = vst.msk [vmem:[#allocation3 + $0x8] sm:$0xff] %vm177_vm3, %v297_v41  ;;  %178 = vst.msk [vmem:[#allocation2] sm:$0xff] %vm177_vm3, %v139_v42  ;;  %v292_v44 = vadd.f32 %v1746_v37, %v291_v43 }
  0xca   :  { %v1946_v45 = vpop.f32.mrf.mxu0 }
  0xcb   :  { %330 = vst.msk [vmem:[#allocation3] sm:$0xff] %vm177_vm3, %v292_v44  ;;  %v154_v46 = vadd.f32 %v1946_v45, %v1736_v35 }
  0xcc   :  { %v1960_v47 = vpop.f32.mrf.mxu1  ;;  %v148_v48 = vpop.f32.mrf.mxu0 }
  0xcd   :  { %181 = vst.msk [vmem:[#allocation2 + $0x18] sm:$0xff] %vm177_vm3, %v154_v46  ;;  %v307_v49 = vadd.f32 %v1960_v47, %v1746_v37  ;;  %v149_v50 = vadd.f32 %v1736_v35, %v148_v48 }
  0xce   :  { %v301_v51 = vpop.f32.mrf.mxu1  ;;  %v494_v38 = vld [vmem:[#allocation2 + $0x8] sm:$0xff] }
  0xcf   :  { %333 = vst.msk [vmem:[#allocation3 + $0x18] sm:$0xff] %vm177_vm3, %v307_v49  ;;  %180 = vst.msk [vmem:[#allocation2 + $0x10] sm:$0xff] %vm177_vm3, %v149_v50  ;;  %v302_v52 = vadd.f32 %v1746_v37, %v301_v51 }
  0xd0   :  { %v1949_v53 = vpop.f32.mrf.mxu0  ;;  %v338_v12 = vld [vmem:[#allocation2] sm:$0xff]  ;;  %v496_v41 = vld [vmem:[#allocation3 + $0x8] sm:$0xff] }
  0xd1   :  { %332 = vst.msk [vmem:[#allocation3 + $0x10] sm:$0xff] %vm177_vm3, %v302_v52  ;;  %v164_v54 = vadd.f32 %v1949_v53, %v1736_v35 }
  0xd2   :  { %v1963_v55 = vpop.f32.mrf.mxu1  ;;  %v158_v56 = vpop.f32.mrf.mxu0  ;;  %v339_v5 = vld [vmem:[#allocation3] sm:$0xff] }
  0xd3   :  { %183 = vst.msk [vmem:[#allocation2 + $0x28] sm:$0xff] %vm177_vm3, %v164_v54  ;;  %v317_v57 = vadd.f32 %v1963_v55, %v1746_v37  ;;  %v159_v58 = vadd.f32 %v1736_v35, %v158_v56 }
  0xd4   :  { %v311_v59 = vpop.f32.mrf.mxu1 }
  0xd5   :  { %335 = vst.msk [vmem:[#allocation3 + $0x28] sm:$0xff] %vm177_vm3, %v317_v57  ;;  %182 = vst.msk [vmem:[#allocation2 + $0x20] sm:$0xff] %vm177_vm3, %v159_v58  ;;  %v312_v60 = vadd.f32 %v1746_v37, %v311_v59 }
  0xd6   :  { %v1952_v61 = vpop.f32.mrf.mxu0  ;;  %v659_v56 = vld [vmem:[#allocation2 + $0x10] sm:$0xff] }
  0xd7   :  { %334 = vst.msk [vmem:[#allocation3 + $0x20] sm:$0xff] %vm177_vm3, %v312_v60  ;;  %v174_v62 = vadd.f32 %v1952_v61, %v1736_v35 }
  0xd8   :  { %v1966_v63 = vpop.f32.mrf.mxu1  ;;  %v168_v0 = vpop.f32.mrf.mxu0  ;;  %v661_v59 = vld [vmem:[#allocation3 + $0x10] sm:$0xff] }
  0xd9   :  { %185 = vst.msk [vmem:[#allocation2 + $0x38] sm:$0xff] %vm177_vm3, %v174_v62  ;;  %v327_v1 = vadd.f32 %v1966_v63, %v1746_v37  ;;  %v169_v2 = vadd.f32 %v1736_v35, %v168_v0 }
  0xda   :  { %v321_v3 = vpop.f32.mrf.mxu1 }
  0xdb   :  { %337 = vst.msk [vmem:[#allocation3 + $0x38] sm:$0xff] %vm177_vm3, %v327_v1  ;;  %184 = vst.msk [vmem:[#allocation2 + $0x30] sm:$0xff] %vm177_vm3, %v169_v2  ;;  %v322_v4 = vadd.f32 %v1746_v37, %v321_v3 }
  0xdc   :  { %v410_v8 = vpop.f32.mrf.mxu0 }
  0xdd   :  { %336 = vst.msk [vmem:[#allocation3 + $0x30] sm:$0xff] %vm177_vm3, %v322_v4  ;;  %v414_v10 = vadd.f32 %v410_v8, %v339_v5 }
  0xde   :  { %v481_v14 = vpop.f32.mrf.mxu1  ;;  %v1985_v17 = vpop.f32.mrf.mxu0 }
  0xdf   :  { %2285 = vtanh.f32 %v414_v10  ;;  %v485_v18 = vadd.f32 %v481_v14, %v338_v12  ;;  %v824_v17 = vld [vmem:[#allocation2 + $0x18] sm:$0xff] }
  0xe0   :  { %v2004_v20 = vpop.f32.mrf.mxu1 }
  0xe1   :  { %2287 = vtanh.f32 %v485_v18 }
  0xec   :  { %v2286_v22 = vpop.eup %2285 }
  0xee   :  { %v2288_v25 = vpop.eup %2287 }
  0xef   :  { %v488_v26 = vadd.f32 %v2288_v25, %v2286_v22  ;;  %v826_v22 = vld [vmem:[#allocation3 + $0x18] sm:$0xff] }
  0xf1   :  { %v489_v28 = vmul.f32 0.1, %v488_v26 }
  0xf3   :  { %v491_v30 = vmul.f32 0.1, %v489_v28 }
  0xf5   :  { %498 = vrot.lane.b32.xlu0 %v491_v30, %s2319_s8 }
 0x167   :  { %v499_v35 = vpop.permute.xlu0 %498 }
 0x168   :  { %v501_v36 = vsel %vm177_vm3, %v489_v28, %v499_v35 }
 0x169   :  { %v502_v37 = vmul.f32 %v501_v36, %v501_v36  ;;  %2041 = vmatmul.mubr.msk.f32.vlgmr.msra.gmra.mxu1 %vm340_vm4, %v501_v36 }
 0x16a   :  { %2063 = vmatpush3.msra.mxu1 %v2357_v7  ;;  %2078 = vmatprep.mubr.msk.f32.mxu1 %vm2318_vm2, %v2317_v9 }
 0x16b   :  { %2022 = vmatmul.mubr.msk.f32.vlgmr.msra.gmra.mxu0 %vm340_vm4, %v502_v37  ;;  %2064 = vmatprep.subr.mxu1 %v2317_v9 }
 0x16c   :  { %2044 = vmatpush3.msra.mxu0 %v2352_v6  ;;  %2065 = vmatpush3.msra.mxu1 %v2379_v13 }
 0x16d   :  { %2045 = vmatprep.subr.mxu0 %v2317_v9  ;;  %2066 = vmatprep.subr.mxu1 %v2317_v9 }
 0x16e   :  { %2046 = vmatpush3.msra.mxu0 %v2372_v11  ;;  %2067 = vmatpush3.msra.mxu1 %v2395_v16 }
 0x16f   :  { %2047 = vmatprep.subr.mxu0 %v2317_v9  ;;  %2068 = vmatprep.subr.mxu1 %v2317_v9 }
 0x170   :  { %2048 = vmatpush3.msra.mxu0 %v2390_v15  ;;  %2069 = vmatpush3.msra.mxu1 %v2417_v21 }
 0x171   :  { %2049 = vmatprep.subr.mxu0 %v2317_v9  ;;  %2070 = vmatprep.subr.mxu1 %v2317_v9 }
 0x172   :  { %2050 = vmatpush3.msra.mxu0 %v2410_v19  ;;  %2071 = vmatpush3.msra.mxu1 %v2433_v24 }
 0x173   :  { %2051 = vmatprep.subr.mxu0 %v2317_v9  ;;  %2072 = vmatprep.subr.mxu1 %v2317_v9 }
 0x174   :  { %2052 = vmatpush3.msra.mxu0 %v2428_v23  ;;  %2073 = vmatpush3.msra.mxu1 %v2455_v29 }
 0x175   :  { %2053 = vmatprep.subr.mxu0 %v2317_v9  ;;  %2074 = vmatprep.subr.mxu1 %v2317_v9 }
 0x176   :  { %2054 = vmatpush3.msra.mxu0 %v2448_v27  ;;  %2075 = vmatpush3.msra.mxu1 %v2471_v32 }
 0x177   :  { %2055 = vmatprep.subr.mxu0 %v2317_v9  ;;  %2076 = vmatprep.subr.mxu1 %v2317_v9 }
 0x178   :  { %2056 = vmatpush3.msra.mxu0 %v2466_v31  ;;  %2077 = vmatpush3.msra.mxu1 %v2487_v34 }
 0x179   :  { %2057 = vmatprep.subr.mxu0 %v2317_v9  ;;  %2059 = vmatprep.mubr.msk.f32.mxu0 %vm2318_vm2, %v2317_v9 }
 0x17a   :  { %2058 = vmatpush3.msra.mxu0 %v2480_v33  ;;  %2100 = vmatprep.subr.mxu1 %v2317_v9 }
 0x17b   :  { %2081 = vmatprep.subr.mxu0 %v2317_v9 }
 0x229   :  { %v646_v39 = vpop.f32.mrf.mxu1 }
 0x22a   :  { %v650_v40 = vadd.f32 %v646_v39, %v494_v38 }
 0x22b   :  { %v572_v42 = vpop.f32.mrf.mxu0  ;;  %v2042_v43 = vpop.f32.mrf.mxu1 }
 0x22c   :  { %v576_v44 = vadd.f32 %v572_v42, %v496_v41  ;;  %2289 = vtanh.f32 %v650_v40 }
 0x22d   :  { %v2023_v45 = vpop.f32.mrf.mxu0 }
 0x22e   :  { %2291 = vtanh.f32 %v576_v44  ;;  %v989_v45 = vld [vmem:[#allocation2 + $0x20] sm:$0xff] }
 0x239   :  { %v2290_v46 = vpop.eup %2289 }
 0x23b   :  { %v2292_v47 = vpop.eup %2291 }
 0x23c   :  { %v653_v48 = vadd.f32 %v2292_v47, %v2290_v46 }
 0x23e   :  { %v654_v49 = vmul.f32 0.1, %v653_v48  ;;  %v991_v48 = vld [vmem:[#allocation3 + $0x20] sm:$0xff] }
 0x240   :  { %v655_v50 = vadd.f32 %v654_v49, %v489_v28 }
 0x242   :  { %v656_v51 = vmul.f32 0.1, %v655_v50 }
 0x244   :  { %v657_v52 = vadd.f32 %v656_v51, %v491_v30 }
 0x246   :  { %663 = vrot.lane.b32.xlu0 %v657_v52, %s2319_s8 }
 0x2b8   :  { %v664_v53 = vpop.permute.xlu0 %663 }
 0x2b9   :  { %v666_v54 = vsel %vm177_vm3, %v655_v50, %v664_v53 }
 0x2ba   :  { %v667_v55 = vmul.f32 %v666_v54, %v666_v54  ;;  %2079 = vmatmul.mubr.msk.f32.vlgmr.msra.gmra.mxu1 %vm340_vm4, %v666_v54 }
 0x2bb   :  { %2101 = vmatpush3.msra.mxu1 %v2357_v7  ;;  %2116 = vmatprep.mubr.msk.f32.mxu1 %vm2318_vm2, %v2317_v9 }
 0x2bc   :  { %2060 = vmatmul.mubr.msk.f32.vlgmr.msra.gmra.mxu0 %vm340_vm4, %v667_v55  ;;  %2102 = vmatprep.subr.mxu1 %v2317_v9 }
 0x2bd   :  { %2082 = vmatpush3.msra.mxu0 %v2352_v6  ;;  %2103 = vmatpush3.msra.mxu1 %v2379_v13 }
 0x2be   :  { %2083 = vmatprep.subr.mxu0 %v2317_v9  ;;  %2104 = vmatprep.subr.mxu1 %v2317_v9 }
 0x2bf   :  { %2084 = vmatpush3.msra.mxu0 %v2372_v11  ;;  %2105 = vmatpush3.msra.mxu1 %v2395_v16 }
 0x2c0   :  { %2085 = vmatprep.subr.mxu0 %v2317_v9  ;;  %2106 = vmatprep.subr.mxu1 %v2317_v9 }
 0x2c1   :  { %2086 = vmatpush3.msra.mxu0 %v2390_v15  ;;  %2107 = vmatpush3.msra.mxu1 %v2417_v21 }
 0x2c2   :  { %2087 = vmatprep.subr.mxu0 %v2317_v9  ;;  %2108 = vmatprep.subr.mxu1 %v2317_v9 }
 0x2c3   :  { %2088 = vmatpush3.msra.mxu0 %v2410_v19  ;;  %2109 = vmatpush3.msra.mxu1 %v2433_v24 }
 0x2c4   :  { %2089 = vmatprep.subr.mxu0 %v2317_v9  ;;  %2110 = vmatprep.subr.mxu1 %v2317_v9 }
 0x2c5   :  { %2090 = vmatpush3.msra.mxu0 %v2428_v23  ;;  %2111 = vmatpush3.msra.mxu1 %v2455_v29 }
 0x2c6   :  { %2091 = vmatprep.subr.mxu0 %v2317_v9  ;;  %2112 = vmatprep.subr.mxu1 %v2317_v9 }
 0x2c7   :  { %2092 = vmatpush3.msra.mxu0 %v2448_v27  ;;  %2113 = vmatpush3.msra.mxu1 %v2471_v32 }
 0x2c8   :  { %2093 = vmatprep.subr.mxu0 %v2317_v9  ;;  %2114 = vmatprep.subr.mxu1 %v2317_v9 }
 0x2c9   :  { %2094 = vmatpush3.msra.mxu0 %v2466_v31  ;;  %2115 = vmatpush3.msra.mxu1 %v2487_v34 }
 0x2ca   :  { %2095 = vmatprep.subr.mxu0 %v2317_v9  ;;  %2097 = vmatprep.mubr.msk.f32.mxu0 %vm2318_vm2, %v2317_v9 }
 0x2cb   :  { %2096 = vmatpush3.msra.mxu0 %v2480_v33  ;;  %2138 = vmatprep.subr.mxu1 %v2317_v9 }
 0x2cc   :  { %2119 = vmatprep.subr.mxu0 %v2317_v9 }
 0x37a   :  { %v811_v57 = vpop.f32.mrf.mxu1 }
 0x37b   :  { %v815_v58 = vadd.f32 %v811_v57, %v659_v56 }
 0x37c   :  { %v737_v60 = vpop.f32.mrf.mxu0  ;;  %v2080_v61 = vpop.f32.mrf.mxu1 }
 0x37d   :  { %v741_v62 = vadd.f32 %v737_v60, %v661_v59  ;;  %2293 = vtanh.f32 %v815_v58 }
 0x37e   :  { %v2061_v63 = vpop.f32.mrf.mxu0 }
 0x37f   :  { %2295 = vtanh.f32 %v741_v62  ;;  %v1154_v63 = vld [vmem:[#allocation2 + $0x28] sm:$0xff] }
 0x38a   :  { %v2294_v0 = vpop.eup %2293 }
 0x38c   :  { %v2296_v1 = vpop.eup %2295 }
 0x38d   :  { %v818_v2 = vadd.f32 %v2296_v1, %v2294_v0 }
 0x38f   :  { %v819_v3 = vmul.f32 0.1, %v818_v2  ;;  %v1156_v2 = vld [vmem:[#allocation3 + $0x28] sm:$0xff] }
 0x391   :  { %v820_v4 = vadd.f32 %v819_v3, %v655_v50 }
 0x393   :  { %v821_v5 = vmul.f32 0.1, %v820_v4 }
 0x395   :  { %v822_v8 = vadd.f32 %v821_v5, %v657_v52 }
 0x397   :  { %828 = vrot.lane.b32.xlu1 %v822_v8, %s2319_s8 }
 0x409   :  { %v829_v10 = vpop.permute.xlu1 %828 }
 0x40a   :  { %v831_v12 = vsel %vm177_vm3, %v820_v4, %v829_v10 }
 0x40b   :  { %v832_v14 = vmul.f32 %v831_v12, %v831_v12  ;;  %2117 = vmatmul.mubr.msk.f32.vlgmr.msra.gmra.mxu1 %vm340_vm4, %v831_v12 }
 0x40c   :  { %2139 = vmatpush3.msra.mxu1 %v2357_v7  ;;  %2154 = vmatprep.mubr.msk.f32.mxu1 %vm2318_vm2, %v2317_v9 }
 0x40d   :  { %2098 = vmatmul.mubr.msk.f32.vlgmr.msra.gmra.mxu0 %vm340_vm4, %v832_v14  ;;  %2140 = vmatprep.subr.mxu1 %v2317_v9 }
 0x40e   :  { %2120 = vmatpush3.msra.mxu0 %v2352_v6  ;;  %2141 = vmatpush3.msra.mxu1 %v2379_v13 }
 0x40f   :  { %2121 = vmatprep.subr.mxu0 %v2317_v9  ;;  %2142 = vmatprep.subr.mxu1 %v2317_v9 }
 0x410   :  { %2122 = vmatpush3.msra.mxu0 %v2372_v11  ;;  %2143 = vmatpush3.msra.mxu1 %v2395_v16 }
 0x411   :  { %2123 = vmatprep.subr.mxu0 %v2317_v9  ;;  %2144 = vmatprep.subr.mxu1 %v2317_v9 }
 0x412   :  { %2124 = vmatpush3.msra.mxu0 %v2390_v15  ;;  %2145 = vmatpush3.msra.mxu1 %v2417_v21 }
 0x413   :  { %2125 = vmatprep.subr.mxu0 %v2317_v9  ;;  %2146 = vmatprep.subr.mxu1 %v2317_v9 }
 0x414   :  { %2126 = vmatpush3.msra.mxu0 %v2410_v19  ;;  %2147 = vmatpush3.msra.mxu1 %v2433_v24 }
 0x415   :  { %2127 = vmatprep.subr.mxu0 %v2317_v9  ;;  %2148 = vmatprep.subr.mxu1 %v2317_v9 }
 0x416   :  { %2128 = vmatpush3.msra.mxu0 %v2428_v23  ;;  %2149 = vmatpush3.msra.mxu1 %v2455_v29 }
 0x417   :  { %2129 = vmatprep.subr.mxu0 %v2317_v9  ;;  %2150 = vmatprep.subr.mxu1 %v2317_v9 }
 0x418   :  { %2130 = vmatpush3.msra.mxu0 %v2448_v27  ;;  %2151 = vmatpush3.msra.mxu1 %v2471_v32 }
 0x419   :  { %2131 = vmatprep.subr.mxu0 %v2317_v9  ;;  %2152 = vmatprep.subr.mxu1 %v2317_v9 }
 0x41a   :  { %2132 = vmatpush3.msra.mxu0 %v2466_v31  ;;  %2153 = vmatpush3.msra.mxu1 %v2487_v34 }
 0x41b   :  { %2133 = vmatprep.subr.mxu0 %v2317_v9  ;;  %2135 = vmatprep.mubr.msk.f32.mxu0 %vm2318_vm2, %v2317_v9 }
 0x41c   :  { %2134 = vmatpush3.msra.mxu0 %v2480_v33  ;;  %2176 = vmatprep.subr.mxu1 %v2317_v9 }
 0x41d   :  { %2157 = vmatprep.subr.mxu0 %v2317_v9 }
 0x4cb   :  { %v976_v18 = vpop.f32.mrf.mxu1 }
 0x4cc   :  { %v980_v20 = vadd.f32 %v976_v18, %v824_v17 }
 0x4cd   :  { %v902_v25 = vpop.f32.mrf.mxu0  ;;  %v2118_v26 = vpop.f32.mrf.mxu1 }
 0x4ce   :  { %v906_v28 = vadd.f32 %v902_v25, %v826_v22  ;;  %2297 = vtanh.f32 %v980_v20 }
 0x4cf   :  { %v2099_v30 = vpop.f32.mrf.mxu0 }
 0x4d0   :  { %2299 = vtanh.f32 %v906_v28 }
 0x4db   :  { %v2298_v35 = vpop.eup %2297 }
 0x4dd   :  { %v2300_v36 = vpop.eup %2299 }
 0x4de   :  { %v983_v37 = vadd.f32 %v2300_v36, %v2298_v35  ;;  %v1651_v36 = vld [vmem:[%s2826_s1 + $0xb8] sm:$0xff] }
 0x4e0   :  { %v984_v38 = vmul.f32 0.1, %v983_v37  ;;  %v1650_v37 = vld [vmem:[%s2826_s1 + $0xb0] sm:$0xff] }
 0x4e2   :  { %v985_v39 = vadd.f32 %v984_v38, %v820_v4  ;;  %v1649_v38 = vld [vmem:[%s2826_s1 + $0xa8] sm:$0xff] }
 0x4e4   :  { %v986_v40 = vmul.f32 0.1, %v985_v39 }
 0x4e6   :  { %v987_v41 = vadd.f32 %v986_v40, %v822_v8  ;;  %v1484_v40 = vld [vmem:[#allocation2 + $0x38] sm:$0xff] }
 0x4e8   :  { %993 = vrot.lane.b32.xlu1 %v987_v41, %s2319_s8 }
 0x55a   :  { %v994_v42 = vpop.permute.xlu1 %993 }
 0x55b   :  { %v996_v43 = vsel %vm177_vm3, %v985_v39, %v994_v42 }
 0x55c   :  { %v997_v44 = vmul.f32 %v996_v43, %v996_v43  ;;  %2155 = vmatmul.mubr.msk.f32.vlgmr.msra.gmra.mxu1 %vm340_vm4, %v996_v43  ;;  %v1486_v43 = vld [vmem:[#allocation3 + $0x38] sm:$0xff] }
 0x55d   :  { %2177 = vmatpush3.msra.mxu1 %v2357_v7  ;;  %2192 = vmatprep.mubr.msk.f32.mxu1 %vm2318_vm2, %v2317_v9 }
 0x55e   :  { %2136 = vmatmul.mubr.msk.f32.vlgmr.msra.gmra.mxu0 %vm340_vm4, %v997_v44  ;;  %2178 = vmatprep.subr.mxu1 %v2317_v9 }
 0x55f   :  { %2158 = vmatpush3.msra.mxu0 %v2352_v6  ;;  %2179 = vmatpush3.msra.mxu1 %v2379_v13 }
 0x560   :  { %2159 = vmatprep.subr.mxu0 %v2317_v9  ;;  %2180 = vmatprep.subr.mxu1 %v2317_v9 }
 0x561   :  { %2160 = vmatpush3.msra.mxu0 %v2372_v11  ;;  %2181 = vmatpush3.msra.mxu1 %v2395_v16 }
 0x562   :  { %2161 = vmatprep.subr.mxu0 %v2317_v9  ;;  %2182 = vmatprep.subr.mxu1 %v2317_v9 }
 0x563   :  { %2162 = vmatpush3.msra.mxu0 %v2390_v15  ;;  %2183 = vmatpush3.msra.mxu1 %v2417_v21 }
 0x564   :  { %2163 = vmatprep.subr.mxu0 %v2317_v9  ;;  %2184 = vmatprep.subr.mxu1 %v2317_v9 }
 0x565   :  { %2164 = vmatpush3.msra.mxu0 %v2410_v19  ;;  %2185 = vmatpush3.msra.mxu1 %v2433_v24 }
 0x566   :  { %2165 = vmatprep.subr.mxu0 %v2317_v9  ;;  %2186 = vmatprep.subr.mxu1 %v2317_v9 }
 0x567   :  { %2166 = vmatpush3.msra.mxu0 %v2428_v23  ;;  %2187 = vmatpush3.msra.mxu1 %v2455_v29 }
 0x568   :  { %2167 = vmatprep.subr.mxu0 %v2317_v9  ;;  %2188 = vmatprep.subr.mxu1 %v2317_v9 }
 0x569   :  { %2168 = vmatpush3.msra.mxu0 %v2448_v27  ;;  %2189 = vmatpush3.msra.mxu1 %v2471_v32 }
 0x56a   :  { %2169 = vmatprep.subr.mxu0 %v2317_v9  ;;  %2190 = vmatprep.subr.mxu1 %v2317_v9 }
 0x56b   :  { %2170 = vmatpush3.msra.mxu0 %v2466_v31  ;;  %2191 = vmatpush3.msra.mxu1 %v2487_v34 }
 0x56c   :  { %2171 = vmatprep.subr.mxu0 %v2317_v9  ;;  %2173 = vmatprep.mubr.msk.f32.mxu0 %vm2318_vm2, %v2317_v9 }
 0x56d   :  { %2172 = vmatpush3.msra.mxu0 %v2480_v33  ;;  %2214 = vmatprep.subr.mxu1 %v2317_v9 }
 0x56e   :  { %2195 = vmatprep.subr.mxu0 %v2317_v9 }
 0x61c   :  { %v1141_v46 = vpop.f32.mrf.mxu1 }
 0x61d   :  { %v1145_v47 = vadd.f32 %v1141_v46, %v989_v45 }
 0x61e   :  { %v1067_v49 = vpop.f32.mrf.mxu0  ;;  %v2156_v50 = vpop.f32.mrf.mxu1 }
 0x61f   :  { %v1071_v51 = vadd.f32 %v1067_v49, %v991_v48  ;;  %2301 = vtanh.f32 %v1145_v47 }
 0x620   :  { %v2137_v52 = vpop.f32.mrf.mxu0 }
 0x621   :  { %2303 = vtanh.f32 %v1071_v51 }
 0x62c   :  { %v2302_v53 = vpop.eup %2301 }
 0x62e   :  { %v2304_v54 = vpop.eup %2303 }
 0x62f   :  { %v1148_v55 = vadd.f32 %v2304_v54, %v2302_v53 }
 0x631   :  { %v1149_v56 = vmul.f32 0.1, %v1148_v55 }
 0x633   :  { %v1150_v57 = vadd.f32 %v1149_v56, %v985_v39  ;;  %v1648_v39 = vld [vmem:[%s2826_s1 + $0xa0] sm:$0xff] }
 0x635   :  { %v1151_v58 = vmul.f32 0.1, %v1150_v57 }
 0x637   :  { %v1152_v59 = vadd.f32 %v1151_v58, %v987_v41 }
 0x639   :  { %1158 = vrot.lane.b32.xlu0 %v1152_v59, %s2319_s8 }
 0x6ab   :  { %v1159_v60 = vpop.permute.xlu0 %1158 }
 0x6ac   :  { %v1161_v61 = vsel %vm177_vm3, %v1150_v57, %v1159_v60 }
 0x6ad   :  { %v1162_v62 = vmul.f32 %v1161_v61, %v1161_v61  ;;  %2193 = vmatmul.mubr.msk.f32.vlgmr.msra.gmra.mxu1 %vm340_vm4, %v1161_v61 }
 0x6ae   :  { %2215 = vmatpush3.msra.mxu1 %v2357_v7  ;;  %2230 = vmatprep.mubr.msk.f32.mxu1 %vm2318_vm2, %v2317_v9 }
 0x6af   :  { %2174 = vmatmul.mubr.msk.f32.vlgmr.msra.gmra.mxu0 %vm340_vm4, %v1162_v62  ;;  %2216 = vmatprep.subr.mxu1 %v2317_v9 }
 0x6b0   :  { %2196 = vmatpush3.msra.mxu0 %v2352_v6  ;;  %2217 = vmatpush3.msra.mxu1 %v2379_v13 }
 0x6b1   :  { %2197 = vmatprep.subr.mxu0 %v2317_v9  ;;  %2218 = vmatprep.subr.mxu1 %v2317_v9 }
 0x6b2   :  { %2198 = vmatpush3.msra.mxu0 %v2372_v11  ;;  %2219 = vmatpush3.msra.mxu1 %v2395_v16 }
 0x6b3   :  { %2199 = vmatprep.subr.mxu0 %v2317_v9  ;;  %2220 = vmatprep.subr.mxu1 %v2317_v9 }
 0x6b4   :  { %2200 = vmatpush3.msra.mxu0 %v2390_v15  ;;  %2221 = vmatpush3.msra.mxu1 %v2417_v21 }
 0x6b5   :  { %2201 = vmatprep.subr.mxu0 %v2317_v9  ;;  %2222 = vmatprep.subr.mxu1 %v2317_v9 }
 0x6b6   :  { %2202 = vmatpush3.msra.mxu0 %v2410_v19  ;;  %2223 = vmatpush3.msra.mxu1 %v2433_v24 }
 0x6b7   :  { %2203 = vmatprep.subr.mxu0 %v2317_v9  ;;  %2224 = vmatprep.subr.mxu1 %v2317_v9 }
 0x6b8   :  { %2204 = vmatpush3.msra.mxu0 %v2428_v23  ;;  %2225 = vmatpush3.msra.mxu1 %v2455_v29 }
 0x6b9   :  { %2205 = vmatprep.subr.mxu0 %v2317_v9  ;;  %2226 = vmatprep.subr.mxu1 %v2317_v9 }
 0x6ba   :  { %2206 = vmatpush3.msra.mxu0 %v2448_v27  ;;  %2227 = vmatpush3.msra.mxu1 %v2471_v32 }
 0x6bb   :  { %2207 = vmatprep.subr.mxu0 %v2317_v9  ;;  %2228 = vmatprep.subr.mxu1 %v2317_v9 }
 0x6bc   :  { %2208 = vmatpush3.msra.mxu0 %v2466_v31  ;;  %2229 = vmatpush3.msra.mxu1 %v2487_v34 }
 0x6bd   :  { %2209 = vmatprep.subr.mxu0 %v2317_v9  ;;  %2211 = vmatprep.mubr.msk.f32.mxu0 %vm2318_vm2, %v2317_v9 }
 0x6be   :  { %2210 = vmatpush3.msra.mxu0 %v2480_v33  ;;  %2252 = vmatprep.subr.mxu1 %v2317_v9 }
 0x6bf   :  { %2233 = vmatprep.subr.mxu0 %v2317_v9 }
 0x76d   :  { %v1306_v0 = vpop.f32.mrf.mxu1 }
 0x76e   :  { %v1310_v1 = vadd.f32 %v1306_v0, %v1154_v63 }
 0x76f   :  { %v1232_v3 = vpop.f32.mrf.mxu0  ;;  %v2194_v4 = vpop.f32.mrf.mxu1 }
 0x770   :  { %v1236_v5 = vadd.f32 %v1232_v3, %v1156_v2  ;;  %2305 = vtanh.f32 %v1310_v1 }
 0x771   :  { %v2175_v8 = vpop.f32.mrf.mxu0 }
 0x772   :  { %2307 = vtanh.f32 %v1236_v5 }
 0x77d   :  { %v2306_v10 = vpop.eup %2305 }
 0x77f   :  { %v2308_v12 = vpop.eup %2307 }
 0x780   :  { %v1313_v14 = vadd.f32 %v2308_v12, %v2306_v10 }
 0x782   :  { %v1314_v17 = vmul.f32 0.1, %v1313_v14 }
 0x784   :  { %v1315_v18 = vadd.f32 %v1314_v17, %v1150_v57 }
 0x786   :  { %v1316_v20 = vmul.f32 0.1, %v1315_v18 }
 0x788   :  { %v1317_v22 = vadd.f32 %v1316_v20, %v1152_v59 }
 0x78a   :  { %1323 = vrot.lane.b32.xlu1 %v1317_v22, %s2319_s8 }
 0x7fc   :  { %v1324_v25 = vpop.permute.xlu1 %1323 }
 0x7fd   :  { %v1326_v26 = vsel %vm177_vm3, %v1315_v18, %v1324_v25 }
 0x7fe   :  { %v1327_v28 = vmul.f32 %v1326_v26, %v1326_v26  ;;  %2231 = vmatmul.mubr.msk.f32.vlgmr.msra.gmra.mxu1 %vm340_vm4, %v1326_v26 }
 0x7ff   :  { %2253 = vmatpush3.msra.mxu1 %v2357_v7  ;;  %2268 = vmatprep.mubr.msk.f32.mxu1 %vm2318_vm2, %v2317_v9 }
 0x800   :  { %2212 = vmatmul.mubr.msk.f32.vlgmr.msra.gmra.mxu0 %vm340_vm4, %v1327_v28  ;;  %2254 = vmatprep.subr.mxu1 %v2317_v9 }
 0x801   :  { %2234 = vmatpush3.msra.mxu0 %v2352_v6  ;;  %2255 = vmatpush3.msra.mxu1 %v2379_v13  ;;  %v1319_v6 = vld [vmem:[#allocation2 + $0x30] sm:$0xff] }
 0x802   :  { %2235 = vmatprep.subr.mxu0 %v2317_v9  ;;  %2256 = vmatprep.subr.mxu1 %v2317_v9  ;;  %v1321_v13 = vld [vmem:[#allocation3 + $0x30] sm:$0xff] }
 0x803   :  { %2236 = vmatpush3.msra.mxu0 %v2372_v11  ;;  %2257 = vmatpush3.msra.mxu1 %v2395_v16 }
 0x804   :  { %2237 = vmatprep.subr.mxu0 %v2317_v9  ;;  %2258 = vmatprep.subr.mxu1 %v2317_v9 }
 0x805   :  { %2238 = vmatpush3.msra.mxu0 %v2390_v15  ;;  %2259 = vmatpush3.msra.mxu1 %v2417_v21 }
 0x806   :  { %2239 = vmatprep.subr.mxu0 %v2317_v9  ;;  %2260 = vmatprep.subr.mxu1 %v2317_v9 }
 0x807   :  { %2240 = vmatpush3.msra.mxu0 %v2410_v19  ;;  %2261 = vmatpush3.msra.mxu1 %v2433_v24 }
 0x808   :  { %2241 = vmatprep.subr.mxu0 %v2317_v9  ;;  %2262 = vmatprep.subr.mxu1 %v2317_v9 }
 0x809   :  { %2242 = vmatpush3.msra.mxu0 %v2428_v23  ;;  %2263 = vmatpush3.msra.mxu1 %v2455_v29 }
 0x80a   :  { %2243 = vmatprep.subr.mxu0 %v2317_v9  ;;  %2264 = vmatprep.subr.mxu1 %v2317_v9 }
 0x80b   :  { %2244 = vmatpush3.msra.mxu0 %v2448_v27  ;;  %2265 = vmatpush3.msra.mxu1 %v2471_v32 }
 0x80c   :  { %2245 = vmatprep.subr.mxu0 %v2317_v9  ;;  %2266 = vmatprep.subr.mxu1 %v2317_v9 }
 0x80d   :  { %2246 = vmatpush3.msra.mxu0 %v2466_v31  ;;  %2267 = vmatpush3.msra.mxu1 %v2487_v34 }
 0x80e   :  { %2247 = vmatprep.subr.mxu0 %v2317_v9  ;;  %2249 = vmatprep.mubr.msk.f32.mxu0 %vm2318_vm2, %v2317_v9 }
 0x80f   :  { %2248 = vmatpush3.msra.mxu0 %v2480_v33 }
 0x810   :  { %2271 = vmatprep.subr.mxu0 %v2317_v9 }
 0x8be   :  { %v1471_v7 = vpop.f32.mrf.mxu1 }
 0x8bf   :  { %v1475_v11 = vadd.f32 %v1471_v7, %v1319_v6 }
 0x8c0   :  { %v1397_v15 = vpop.f32.mrf.mxu0  ;;  %v2232_v16 = vpop.f32.mrf.mxu1 }
 0x8c1   :  { %v1401_v19 = vadd.f32 %v1397_v15, %v1321_v13  ;;  %2309 = vtanh.f32 %v1475_v11 }
 0x8c2   :  { %v2213_v21 = vpop.f32.mrf.mxu0 }
 0x8c3   :  { %2311 = vtanh.f32 %v1401_v19 }
 0x8ce   :  { %v2310_v23 = vpop.eup %2309 }
 0x8d0   :  { %v2312_v24 = vpop.eup %2311 }
 0x8d1   :  { %v1478_v27 = vadd.f32 %v2312_v24, %v2310_v23 }
 0x8d3   :  { %v1479_v29 = vmul.f32 0.1, %v1478_v27 }
 0x8d5   :  { %v1480_v31 = vadd.f32 %v1479_v29, %v1315_v18 }
 0x8d7   :  { %v1481_v32 = vmul.f32 0.1, %v1480_v31 }
 0x8d9   :  { %v1482_v34 = vadd.f32 %v1481_v32, %v1317_v22 }
 0x8db   :  { %1488 = vrot.lane.b32.xlu0 %v1482_v34, %s2319_s8 }
 0x94d   :  { %v1489_v33 = vpop.permute.xlu0 %1488 }
 0x94e   :  { %v1491_v30 = vsel %vm177_vm3, %v1480_v31, %v1489_v33 }
 0x94f   :  { %v1492_v35 = vmul.f32 %v1491_v30, %v1491_v30  ;;  %2269 = vmatmul.mubr.msk.f32.vlgmr.msra.gmra.mxu1 %vm340_vm4, %v1491_v30 }
 0x951   :  { %2250 = vmatmul.mubr.msk.f32.vlgmr.msra.gmra.mxu0 %vm340_vm4, %v1492_v35 }
 0x952   :  { %2279 = vmatprep.mubr.msk.f32.mxu0 %vm2318_vm2, %v2317_v9  ;;  %2272 = vmatpush3.msra.mxu0 %v1651_v36 }
 0x953   :  { %2273 = vmatprep.subr.mxu0 %v2317_v9 }
 0x954   :  { %2274 = vmatpush3.msra.mxu0 %v1650_v37 }
 0x955   :  { %2275 = vmatprep.subr.mxu0 %v2317_v9 }
 0x956   :  { %2276 = vmatpush3.msra.mxu0 %v1649_v38 }
 0x957   :  { %2277 = vmatprep.subr.mxu0 %v2317_v9  ;;  %v1770_v9 = vld [vmem:[%s2826_s1 + $0xc0] ss:$0 sm:$0xff] }
 0x958   :  { %2278 = vmatpush3.msra.mxu0 %v1648_v39 }
 0xa0f   :  { %v1636_v41 = vpop.f32.mrf.mxu1 }
 0xa10   :  { %v1640_v42 = vadd.f32 %v1636_v41, %v1484_v40 }
 0xa11   :  { %v1562_v44 = vpop.f32.mrf.mxu0  ;;  %v2270_v45 = vpop.f32.mrf.mxu1 }
 0xa12   :  { %v1566_v46 = vadd.f32 %v1562_v44, %v1486_v43  ;;  %2313 = vtanh.f32 %v1640_v42 }
 0xa13   :  { %v2251_v47 = vpop.f32.mrf.mxu0 }
 0xa14   :  { %2315 = vtanh.f32 %v1566_v46 }
 0xa1f   :  { %v2314_v48 = vpop.eup %2313 }
 0xa21   :  { %v2316_v49 = vpop.eup %2315 }
 0xa22   :  { %v1643_v50 = vadd.f32 %v2316_v49, %v2314_v48 }
 0xa24   :  { %v1644_v51 = vmul.f32 0.1, %v1643_v50 }
 0xa26   :  { %v1645_v52 = vadd.f32 %v1644_v51, %v1480_v31 }
 0xa28   :  { %v1646_v53 = vmul.f32 0.1, %v1645_v52 }
 0xa2a   :  { %v1647_v54 = vadd.f32 %v1646_v53, %v1482_v34 }
 0xa2c   :  { %2280 = vmatmul.mubr.msk.f32.vlgmr.msra.gmra.mxu0 %vm177_vm3, %v1647_v54 }
 0xaec   :  { %v1726_v55 = vpop.f32.mrf.mxu0 }
 0xaed   :  { %v1727_v56 = vadd.f32 %v1770_v9, %v1726_v55 }
 0xaee   :  { %v2281_v57 = vpop.f32.mrf.mxu0 }
 0xaef   :  { %1731 = vst.msk [vmem:[%s2828_s2] sm:$0xff] %vm1730_vm5, %v1727_v56 }

</bundles_post_ra>
